<compile_context>
chip_gen: v7x
topology: tpu7x:2x2x1
jax: 0.10.0
libtpu: 0.0.40
codegen_flags: <defaults>
</compile_context>

<pallas_src>
import functools

import jax
import jax.numpy as jnp
from jax import lax
from jax.experimental import pallas as pl
from jax.experimental.pallas import tpu as pltpu


def _round_up(x, m):
    return ((x + m - 1) // m) * m


# ----------------------------------------------------------------------------
# Fused deep-supervision BCE-with-logits kernel body
# ----------------------------------------------------------------------------
def _make_kernel(n_out, weights, m_valid, row_tile, blocks_total, bpc, num_cores):
    needs_mask = blocks_total * row_tile * 128 != m_valid   # partial last block
    has_dead = num_cores * bpc != blocks_total              # odd split across cores
    last_blk = blocks_total - 1

    def kernel(*refs):
        head_refs = refs[:n_out]
        tgt_ref = refs[n_out]
        loss_ref = refs[n_out + 1]
        acc_ref = refs[n_out + 2]

        c = pl.program_id(0)          # TensorCore split (parallel)
        j = pl.program_id(1)          # row-block reduction (arbitrary)
        blk = c * bpc + j             # global row-block index

        @pl.when(j == 0)
        def _():
            acc_ref[...] = jnp.zeros_like(acc_ref)

        def accumulate(masked):
            t = tgt_ref[...].astype(jnp.float32)              # (row_tile, 128)
            total = None
            for w, ref in zip(weights, head_refs):
                x = ref[...].astype(jnp.float32)
                # Numerically stable BCE with logits (VPU + EUP exp/log).
                per = (jnp.maximum(x, 0.0) - x * t
                       + jnp.log(1.0 + jnp.exp(-jnp.abs(x))))
                contrib = per if w == 1.0 else per * w
                total = contrib if total is None else total + contrib
            if masked:
                # Only the last valid block runs this branch; its base row is
                # static.  OOB rows/lanes may hold garbage (NaN/Inf) -> select,
                # never multiply-by-mask.
                ridx = lax.broadcasted_iota(jnp.int32, total.shape, 0)
                lidx = lax.broadcasted_iota(jnp.int32, total.shape, 1)
                gidx = (last_blk * row_tile + ridx) * 128 + lidx
                total = jnp.where(gidx < m_valid, total, 0.0)
            acc_ref[...] += total

        if needs_mask:
            @pl.when(blk < last_blk)
            def _():
                accumulate(False)          # hot loop: no mask ops

            @pl.when(blk == last_blk)
            def _():
                accumulate(True)           # tail block only
        elif has_dead:
            @pl.when(blk <= last_blk)
            def _():
                accumulate(False)          # skip the dead (duplicated) block
        else:
            accumulate(False)

        @pl.when(j == bpc - 1)
        def _():
            partial = jnp.sum(acc_ref[...])                   # lane+sublane reduce
            lane = lax.broadcasted_iota(jnp.int32, (1, 128), 1)
            loss_ref[...] = jnp.where(lane == 0, partial, 0.0)

    return kernel


# ----------------------------------------------------------------------------
# Wrapper
# ----------------------------------------------------------------------------
@functools.partial(jax.jit, static_argnames=("ds_weights", "row_tile"))
def deep_supervision_loss(outputs, targets, ds_weights=(1.0, 0.4, 0.3, 0.2),
                          row_tile=2048):
    """Weighted sum of BCE-with-logits (mean) losses over deep-supervision heads."""
    if not isinstance(outputs, (tuple, list)):
        heads = (outputs,)
        weights = (1.0,)                 # single-output path: plain base criterion
    else:
        heads = tuple(outputs)
        if len(heads) > len(ds_weights):
            raise ValueError("more deep-supervision outputs than ds_weights")
        weights = tuple(float(ds_weights[i]) for i in range(len(heads)))

    n_out = len(heads)
    m = int(targets.size)
    for h in heads:
        if int(h.size) != m:
            raise ValueError("every deep-supervision output must match targets size")

    m_pad = _round_up(m, 128)
    rows_total = m_pad // 128

    def to_rows(a):
        a = jnp.reshape(a, (-1,))         # contiguous reshape, native dtype kept
        if m_pad != m:
            # TODO(synk): only hit when numel % 128 != 0; costs one HBM copy.
            a = jnp.pad(a, (0, m_pad - m))
        return jnp.reshape(a, (rows_total, 128))

    heads2d = tuple(to_rows(h) for h in heads)
    tgt2d = to_rows(targets)

    # Sublane-packed row-block tiling (row_tile rows x 128 lanes per step).
    row_tile = max(8, _round_up(int(row_tile), 8))
    if rows_total <= row_tile:
        row_tile = rows_total             # full-extent block (any row count allowed)
        blocks_total = 1
    else:
        blocks_total = pl.cdiv(rows_total, row_tile)

    num_cores = 2 if blocks_total >= 2 else 1     # dual-TC split (v7x); no-op on 1 TC
    bpc = pl.cdiv(blocks_total, num_cores)

    def row_map(c, j):
        blk = c * bpc + j
        return (jnp.minimum(blk, blocks_total - 1), 0)

    in_specs = [pl.BlockSpec((row_tile, 128), row_map) for _ in range(n_out + 1)]
    out_spec = pl.BlockSpec((1, 128), lambda c, j: (0, c))

    # VMEM budget: double-buffered native-dtype inputs + f32 accumulator,
    # with headroom, capped below v7x's 64 MiB physical VMEM.
    blk_elems = row_tile * 128
    needed = sum(2 * blk_elems * a.dtype.itemsize for a in (*heads2d, tgt2d))
    needed += blk_elems * 4
    vmem_limit = int(min(48 * 1024 * 1024, max(16 * 1024 * 1024, 2 * needed)))

    kernel = _make_kernel(n_out, weights, m, row_tile, blocks_total, bpc, num_cores)
    partials = pl.pallas_call(
        kernel,
        out_shape=jax.ShapeDtypeStruct((1, num_cores * 128), jnp.float32),
        grid=(num_cores, bpc),
        in_specs=in_specs,
        out_specs=out_spec,
        scratch_shapes=[pltpu.VMEM((row_tile, 128), jnp.float32)],
        compiler_params=pltpu.CompilerParams(
            dimension_semantics=("parallel", "arbitrary"),
            vmem_limit_bytes=vmem_limit),
    )(*heads2d, tgt2d)

    # Per-core partial sums live at lanes c*128; everything else is zero.
    return jnp.sum(partials) * (1.0 / m)


# ----------------------------------------------------------------------------
# Pure-JAX reference (mirrors the PyTorch module with BCEWithLogitsLoss(mean))
# ----------------------------------------------------------------------------
def _bce_with_logits_mean(x, t):
    x = x.astype(jnp.float32)
    t = t.astype(jnp.float32)
    per = jnp.maximum(x, 0.0) - x * t + jnp.log(1.0 + jnp.exp(-jnp.abs(x)))
    return jnp.mean(per)


def deep_supervision_loss_ref(outputs, targets, ds_weights=(1.0, 0.4, 0.3, 0.2)):
    if not isinstance(outputs, (tuple, list)):
        return _bce_with_logits_mean(outputs, targets)
    loss = 0.0
    for idx, o in enumerate(outputs):
        loss = loss + ds_weights[idx] * _bce_with_logits_mean(o, targets)
    return loss


if __name__ == "__main__":
    key = jax.random.PRNGKey(0)
    ds_weights = (1.0, 0.4, 0.3, 0.2)

    # --- Main test: 4 deep-supervision heads, M divisible by 128 ------------
    B, C, H, W = 2, 1, 16, 16
    n_out = 4
    keys = jax.random.split(key, n_out + 1)
    outputs = tuple(
        jax.random.normal(keys[i], (B, C, H, W), jnp.float32) for i in range(n_out)
    )
    targets = jax.random.bernoulli(keys[n_out], 0.5, (B, C, H, W)).astype(jnp.float32)

    loss = jax.block_until_ready(
        deep_supervision_loss(outputs, targets, ds_weights=ds_weights))
    ref = deep_supervision_loss_ref(outputs, targets, ds_weights)
    assert jnp.allclose(loss, ref, atol=1e-5, rtol=1e-5), (loss, ref)

    # --- Single-output (non-tuple) path: plain base criterion ---------------
    loss1 = jax.block_until_ready(
        deep_supervision_loss(outputs[0], targets, ds_weights=ds_weights))
    ref1 = deep_supervision_loss_ref(outputs[0], targets, ds_weights)
    assert jnp.allclose(loss1, ref1, atol=1e-5, rtol=1e-5), (loss1, ref1)

    # --- Ragged test: M % 128 != 0 exercises the masked tail branch ---------
    H2, W2 = 20, 24
    keys2 = jax.random.split(jax.random.PRNGKey(1), 3)
    outputs2 = tuple(
        jax.random.normal(keys2[i], (B, C, H2, W2), jnp.float32) for i in range(2)
    )
    targets2 = jax.random.bernoulli(keys2[2], 0.5, (B, C, H2, W2)).astype(jnp.float32)
    loss2 = jax.block_until_ready(
        deep_supervision_loss(outputs2, targets2, ds_weights=ds_weights))
    ref2 = deep_supervision_loss_ref(outputs2, targets2, ds_weights)
    assert jnp.allclose(loss2, ref2, atol=1e-5, rtol=1e-5), (loss2, ref2)

    print("KERNEL_OK")
</pallas_src>

<mosaic_0001>
module attributes {stable_mosaic.version = 11 : i64} {
  func.func @kernel(%arg0: i32, %arg1: i32, %arg2: memref<4x128xf32, #tpu.memory_space<vmem>>, %arg3: memref<4x128xf32, #tpu.memory_space<vmem>>, %arg4: memref<4x128xf32, #tpu.memory_space<vmem>>, %arg5: memref<4x128xf32, #tpu.memory_space<vmem>>, %arg6: memref<4x128xf32, #tpu.memory_space<vmem>>, %arg7: memref<1x128xf32, #tpu.memory_space<vmem>>, %arg8: memref<4x128xf32, #tpu.memory_space<vmem>>) attributes {dimension_semantics = [#tpu.dimension_semantics<parallel>, #tpu.dimension_semantics<arbitrary>], iteration_bounds = array<i64: 1, 1>, scalar_prefetch = 0 : i64, scratch_operands = 1 : i64, tpu.core_type = #tpu.core_type<tc>, window_params = [{transform_indices = @transform_0, window_bounds = array<i64: 4, 128>}, {transform_indices = @transform_1, window_bounds = array<i64: 4, 128>}, {transform_indices = @transform_2, window_bounds = array<i64: 4, 128>}, {transform_indices = @transform_3, window_bounds = array<i64: 4, 128>}, {transform_indices = @transform_4, window_bounds = array<i64: 4, 128>}, {transform_indices = @transform_5, window_bounds = array<i64: 1, 128>}]} {
    %c0_i32 = arith.constant 0 : i32
    %0 = arith.cmpi eq, %arg1, %c0_i32 : i32
    %1 = arith.extui %0 : i1 to i32
    %c0_i32_0 = arith.constant 0 : i32
    %2 = arith.cmpi ne, %1, %c0_i32_0 : i32
    scf.if %2 {
      %cst_30 = arith.constant 0.000000e+00 : f32
      %71 = vector.broadcast %cst_30 : f32 to vector<4x128xf32>
      %c0_31 = arith.constant 0 : index
      %c0_32 = arith.constant 0 : index
      %72 = vector.load %arg8[%c0_31, %c0_32] : memref<4x128xf32, #tpu.memory_space<vmem>>, vector<4x128xf32>
      tpu.vector_store %arg8[%c0_31, %c0_32], %71 {strides = array<i32>} : memref<4x128xf32, #tpu.memory_space<vmem>>, vector<4x128xf32>,
    } else {
    }
    %c0 = arith.constant 0 : index
    %c0_1 = arith.constant 0 : index
    %3 = vector.load %arg6[%c0, %c0_1] : memref<4x128xf32, #tpu.memory_space<vmem>>, vector<4x128xf32>
    %c0_2 = arith.constant 0 : index
    %c0_3 = arith.constant 0 : index
    %4 = vector.load %arg2[%c0_2, %c0_3] : memref<4x128xf32, #tpu.memory_space<vmem>>, vector<4x128xf32>
    %cst = arith.constant 0.000000e+00 : f32
    %5 = vector.broadcast %cst : f32 to vector<4x128xf32>
    %6 = arith.maximumf %4, %5 : vector<4x128xf32>
    %7 = arith.mulf %4, %3 : vector<4x128xf32>
    %8 = arith.subf %6, %7 : vector<4x128xf32>
    %9 = math.absf %4 : vector<4x128xf32>
    %cst_4 = arith.constant 0.000000e+00 : f32
    %10 = vector.broadcast %cst_4 : f32 to vector<4x128xf32>
    %11 = arith.subf %10, %9 : vector<4x128xf32>
    %12 = math.exp %11 : vector<4x128xf32>
    %cst_5 = arith.constant 1.000000e+00 : f32
    %13 = vector.broadcast %cst_5 : f32 to vector<4x128xf32>
    %14 = arith.addf %13, %12 : vector<4x128xf32>
    %15 = math.log %14 : vector<4x128xf32>
    %16 = arith.addf %8, %15 : vector<4x128xf32>
    %c0_6 = arith.constant 0 : index
    %c0_7 = arith.constant 0 : index
    %17 = vector.load %arg3[%c0_6, %c0_7] : memref<4x128xf32, #tpu.memory_space<vmem>>, vector<4x128xf32>
    %cst_8 = arith.constant 0.000000e+00 : f32
    %18 = vector.broadcast %cst_8 : f32 to vector<4x128xf32>
    %19 = arith.maximumf %17, %18 : vector<4x128xf32>
    %20 = arith.mulf %17, %3 : vector<4x128xf32>
    %21 = arith.subf %19, %20 : vector<4x128xf32>
    %22 = math.absf %17 : vector<4x128xf32>
    %cst_9 = arith.constant 0.000000e+00 : f32
    %23 = vector.broadcast %cst_9 : f32 to vector<4x128xf32>
    %24 = arith.subf %23, %22 : vector<4x128xf32>
    %25 = math.exp %24 : vector<4x128xf32>
    %cst_10 = arith.constant 1.000000e+00 : f32
    %26 = vector.broadcast %cst_10 : f32 to vector<4x128xf32>
    %27 = arith.addf %26, %25 : vector<4x128xf32>
    %28 = math.log %27 : vector<4x128xf32>
    %29 = arith.addf %21, %28 : vector<4x128xf32>
    %cst_11 = arith.constant 4.000000e-01 : f32
    %30 = vector.broadcast %cst_11 : f32 to vector<4x128xf32>
    %31 = arith.mulf %29, %30 : vector<4x128xf32>
    %32 = arith.addf %16, %31 : vector<4x128xf32>
    %c0_12 = arith.constant 0 : index
    %c0_13 = arith.constant 0 : index
    %33 = vector.load %arg4[%c0_12, %c0_13] : memref<4x128xf32, #tpu.memory_space<vmem>>, vector<4x128xf32>
    %cst_14 = arith.constant 0.000000e+00 : f32
    %34 = vector.broadcast %cst_14 : f32 to vector<4x128xf32>
    %35 = arith.maximumf %33, %34 : vector<4x128xf32>
    %36 = arith.mulf %33, %3 : vector<4x128xf32>
    %37 = arith.subf %35, %36 : vector<4x128xf32>
    %38 = math.absf %33 : vector<4x128xf32>
    %cst_15 = arith.constant 0.000000e+00 : f32
    %39 = vector.broadcast %cst_15 : f32 to vector<4x128xf32>
    %40 = arith.subf %39, %38 : vector<4x128xf32>
    %41 = math.exp %40 : vector<4x128xf32>
    %cst_16 = arith.constant 1.000000e+00 : f32
    %42 = vector.broadcast %cst_16 : f32 to vector<4x128xf32>
    %43 = arith.addf %42, %41 : vector<4x128xf32>
    %44 = math.log %43 : vector<4x128xf32>
    %45 = arith.addf %37, %44 : vector<4x128xf32>
    %cst_17 = arith.constant 3.000000e-01 : f32
    %46 = vector.broadcast %cst_17 : f32 to vector<4x128xf32>
    %47 = arith.mulf %45, %46 : vector<4x128xf32>
    %48 = arith.addf %32, %47 : vector<4x128xf32>
    %c0_18 = arith.constant 0 : index
    %c0_19 = arith.constant 0 : index
    %49 = vector.load %arg5[%c0_18, %c0_19] : memref<4x128xf32, #tpu.memory_space<vmem>>, vector<4x128xf32>
    %cst_20 = arith.constant 0.000000e+00 : f32
    %50 = vector.broadcast %cst_20 : f32 to vector<4x128xf32>
    %51 = arith.maximumf %49, %50 : vector<4x128xf32>
    %52 = arith.mulf %49, %3 : vector<4x128xf32>
    %53 = arith.subf %51, %52 : vector<4x128xf32>
    %54 = math.absf %49 : vector<4x128xf32>
    %cst_21 = arith.constant 0.000000e+00 : f32
    %55 = vector.broadcast %cst_21 : f32 to vector<4x128xf32>
    %56 = arith.subf %55, %54 : vector<4x128xf32>
    %57 = math.exp %56 : vector<4x128xf32>
    %cst_22 = arith.constant 1.000000e+00 : f32
    %58 = vector.broadcast %cst_22 : f32 to vector<4x128xf32>
    %59 = arith.addf %58, %57 : vector<4x128xf32>
    %60 = math.log %59 : vector<4x128xf32>
    %61 = arith.addf %53, %60 : vector<4x128xf32>
    %cst_23 = arith.constant 2.000000e-01 : f32
    %62 = vector.broadcast %cst_23 : f32 to vector<4x128xf32>
    %63 = arith.mulf %61, %62 : vector<4x128xf32>
    %64 = arith.addf %48, %63 : vector<4x128xf32>
    %c0_24 = arith.constant 0 : index
    %c0_25 = arith.constant 0 : index
    %65 = vector.load %arg8[%c0_24, %c0_25] : memref<4x128xf32, #tpu.memory_space<vmem>>, vector<4x128xf32>
    %66 = arith.addf %65, %64 : vector<4x128xf32>
    %c0_26 = arith.constant 0 : index
    %c0_27 = arith.constant 0 : index
    %67 = vector.load %arg8[%c0_26, %c0_27] : memref<4x128xf32, #tpu.memory_space<vmem>>, vector<4x128xf32>
    tpu.vector_store %arg8[%c0_26, %c0_27], %66 {strides = array<i32>} : memref<4x128xf32, #tpu.memory_space<vmem>>, vector<4x128xf32>,
    %c0_i32_28 = arith.constant 0 : i32
    %68 = arith.cmpi eq, %arg1, %c0_i32_28 : i32
    %69 = arith.extui %68 : i1 to i32
    %c0_i32_29 = arith.constant 0 : i32
    %70 = arith.cmpi ne, %69, %c0_i32_29 : i32
    scf.if %70 {
      %c0_30 = arith.constant 0 : index
      %c0_31 = arith.constant 0 : index
      %71 = vector.load %arg8[%c0_30, %c0_31] : memref<4x128xf32, #tpu.memory_space<vmem>>, vector<4x128xf32>
      %72 = vector.shape_cast %71 : vector<4x128xf32> to vector<1x4x128xf32>
      %cst_32 = arith.constant dense<0.000000e+00> : vector<1xf32>
      %73 = vector.multi_reduction <add>, %72, %cst_32 [1, 2] : vector<1x4x128xf32> to vector<1xf32>
      %74 = vector.shape_cast %73 : vector<1xf32> to vector<1x1x1xf32>
      %75 = vector.extract %74[0, 0, 0] : f32 from vector<1x1x1xf32>
      %76 = tpu.iota {dimensions = array<i32: 1>} : vector<1x128xi32>
      %c0_i32_33 = arith.constant 0 : i32
      %77 = vector.broadcast %c0_i32_33 : i32 to vector<1x128xi32>
      %78 = arith.cmpi eq, %76, %77 : vector<1x128xi32>
      %cst_34 = arith.constant 0.000000e+00 : f32
      %79 = vector.broadcast %75 : f32 to vector<1x128xf32>
      %80 = vector.broadcast %cst_34 : f32 to vector<1x128xf32>
      %81 = arith.select %78, %79, %80 : vector<1x128xi1>, vector<1x128xf32>
      %c0_35 = arith.constant 0 : index
      %c0_36 = arith.constant 0 : index
      %82 = vector.load %arg7[%c0_35, %c0_36] : memref<1x128xf32, #tpu.memory_space<vmem>>, vector<1x128xf32>
      tpu.vector_store %arg7[%c0_35, %c0_36], %81 {strides = array<i32>} : memref<1x128xf32, #tpu.memory_space<vmem>>, vector<1x128xf32>,
    } else {
    }
    return
  }
  func.func @transform_0(%arg0: i32, %arg1: i32) -> (i32, i32) {
    %c1_i32 = arith.constant 1 : i32
    %0 = arith.muli %arg0, %c1_i32 : i32
    %1 = arith.addi %0, %arg1 : i32
    %c0_i32 = arith.constant 0 : i32
    %2 = arith.minsi %1, %c0_i32 : i32
    %c0_i32_0 = arith.constant 0 : i32
    %c0_i32_1 = arith.constant 0 : i32
    return %2, %c0_i32_0 : i32, i32
  }
  func.func @transform_1(%arg0: i32, %arg1: i32) -> (i32, i32) {
    %c1_i32 = arith.constant 1 : i32
    %0 = arith.muli %arg0, %c1_i32 : i32
    %1 = arith.addi %0, %arg1 : i32
    %c0_i32 = arith.constant 0 : i32
    %2 = arith.minsi %1, %c0_i32 : i32
    %c0_i32_0 = arith.constant 0 : i32
    %c0_i32_1 = arith.constant 0 : i32
    return %2, %c0_i32_0 : i32, i32
  }
  func.func @transform_2(%arg0: i32, %arg1: i32) -> (i32, i32) {
    %c1_i32 = arith.constant 1 : i32
    %0 = arith.muli %arg0, %c1_i32 : i32
    %1 = arith.addi %0, %arg1 : i32
    %c0_i32 = arith.constant 0 : i32
    %2 = arith.minsi %1, %c0_i32 : i32
    %c0_i32_0 = arith.constant 0 : i32
    %c0_i32_1 = arith.constant 0 : i32
    return %2, %c0_i32_0 : i32, i32
  }
  func.func @transform_3(%arg0: i32, %arg1: i32) -> (i32, i32) {
    %c1_i32 = arith.constant 1 : i32
    %0 = arith.muli %arg0, %c1_i32 : i32
    %1 = arith.addi %0, %arg1 : i32
    %c0_i32 = arith.constant 0 : i32
    %2 = arith.minsi %1, %c0_i32 : i32
    %c0_i32_0 = arith.constant 0 : i32
    %c0_i32_1 = arith.constant 0 : i32
    return %2, %c0_i32_0 : i32, i32
  }
  func.func @transform_4(%arg0: i32, %arg1: i32) -> (i32, i32) {
    %c1_i32 = arith.constant 1 : i32
    %0 = arith.muli %arg0, %c1_i32 : i32
    %1 = arith.addi %0, %arg1 : i32
    %c0_i32 = arith.constant 0 : i32
    %2 = arith.minsi %1, %c0_i32 : i32
    %c0_i32_0 = arith.constant 0 : i32
    %c0_i32_1 = arith.constant 0 : i32
    return %2, %c0_i32_0 : i32, i32
  }
  func.func @transform_5(%arg0: i32, %arg1: i32) -> (i32, i32) {
    %c0_i32 = arith.constant 0 : i32
    %c0_i32_0 = arith.constant 0 : i32
    return %c0_i32, %arg0 : i32, i32
  }
}

</mosaic_0001>

<bundles_post_ra>
// kernel: deep_supervision_loss.1
= control target key start
LH: loop header
LB: loop body
LE: loop exit
PB: predicated region body
PF: predicated region fallthrough
CT: control target
= control target key end

     0   :  { %v292_v0 = vmov 0.0   ;;  %vm222_vm0 = vcmask 1043456   ;;  %s341_s0 = inlined_call_operand.vmem [shape: f32[4,128], index: 0, kind: input, shape index: {}]   ;;  %s342_s1 = inlined_call_operand.vmem [shape: f32[4,128], index: 1, kind: input, shape index: {}]   ;;  %s343_s2 = inlined_call_operand.vmem [shape: f32[4,128], index: 2, kind: input, shape index: {}]   ;;  %s344_s3 = inlined_call_operand.vmem [shape: f32[4,128], index: 3, kind: input, shape index: {}]   ;;  %s345_s4 = inlined_call_operand.vmem [shape: f32[4,128], index: 4, kind: input, shape index: {}]   ;;  %s346_s5 = inlined_call_operand.vmem [shape: f32[1,128], index: 5, kind: output, shape index: {}]  }
   0x1   :  { %159 = vst [vmem:[#allocation2] sm:$0xf] %v292_v0  ;;  %v161_v1 = vld [vmem:[%s341_s0] sm:$0xf] }
   0x2   :  { %v173_v2 = vld [vmem:[%s342_s1] sm:$0xf]  ;;  %v165_v3 = vand.u32 2147483647, %v161_v1  ;;  %v162_v26 = vmax.f32 %v161_v1, 0.0 }
   0x3   :  { %v187_v4 = vld [vmem:[%s343_s2] sm:$0xf]  ;;  %v177_v5 = vand.u32 2147483647, %v173_v2  ;;  %v174_v28 = vmax.f32 %v173_v2, 0.0 }
   0x4   :  { %v201_v6 = vld [vmem:[%s344_s3] sm:$0xf]  ;;  %v166_v7 = vsub.f32 0.0, %v165_v3  ;;  %v191_v8 = vand.u32 2147483647, %v187_v4  ;;  %v188_v30 = vmax.f32 %v187_v4, 0.0  ;;  %v233_v3 = vlaneseq }
   0x5   :  { %v178_v9 = vsub.f32 0.0, %v177_v5  ;;  %v205_v12 = vand.u32 2147483647, %v201_v6  ;;  %v160_v25 = vld [vmem:[%s345_s4] sm:$0xf]  ;;  %v202_v32 = vmax.f32 %v201_v6, 0.0 }
   0x6   :  { %v167_v10 = vmul.f32 1.442695, %v166_v7  ;;  %v192_v11 = vsub.f32 0.0, %v191_v8  ;;  %v163_v27 = vmul.f32 %v161_v1, %v160_v25  ;;  %v175_v29 = vmul.f32 %v173_v2, %v160_v25 }
   0x7   :  { %v179_v13 = vmul.f32 1.442695, %v178_v9  ;;  %v206_v15 = vsub.f32 0.0, %v205_v12  ;;  %v189_v31 = vmul.f32 %v187_v4, %v160_v25  ;;  %v203_v33 = vmul.f32 %v201_v6, %v160_v25 }
   0x8   :  { %276 = vpow2.f32 %v167_v10  ;;  %v193_v14 = vmul.f32 1.442695, %v192_v11  ;;  %v164_v35 = vsub.f32 %v162_v26, %v163_v27  ;;  %v176_v36 = vsub.f32 %v174_v28, %v175_v29  ;;  %v215_v55 = vld [vmem:[#allocation2] sm:$0xf] }
   0x9   :  { %278 = vpow2.f32 %v179_v13  ;;  %v207_v16 = vmul.f32 1.442695, %v206_v15  ;;  %v190_v39 = vsub.f32 %v188_v30, %v189_v31  ;;  %v204_v43 = vsub.f32 %v202_v32, %v203_v33 }
   0xa   :  { %280 = vpow2.f32 %v193_v14  ;;  %v234_v4 = vand.u32 127, %v233_v3 }
   0xb   :  { %282 = vpow2.f32 %v207_v16 }
   0xc   :  { %vm235_vm1 = vcmp.eq.s32.totalorder %v234_v4, 0 }
  0x12   :  { %v277_v17 = vpop.eup %276 }
  0x13   :  { %v279_v18 = vpop.eup %278  ;;  %v169_v19 = vadd.f32 1.0, %v277_v17 }
  0x14   :  { %v281_v20 = vpop.eup %280  ;;  %v181_v21 = vadd.f32 1.0, %v279_v18 }
  0x15   :  { %284 = vlog2.f32 %v169_v19  ;;  %v195_v22 = vadd.f32 1.0, %v281_v20  ;;  %v283_v23 = vpop.eup %282 }
  0x16   :  { %286 = vlog2.f32 %v181_v21  ;;  %v209_v24 = vadd.f32 1.0, %v283_v23 }
  0x17   :  { %288 = vlog2.f32 %v195_v22 }
  0x18   :  { %290 = vlog2.f32 %v209_v24 }
  0x1f   :  { %v285_v34 = vpop.eup %284 }
  0x20   :  { %v287_v37 = vpop.eup %286  ;;  %v171_v38 = vmul.f32 0.6931472, %v285_v34 }
  0x21   :  { %v289_v40 = vpop.eup %288  ;;  %v183_v41 = vmul.f32 0.6931472, %v287_v37 }
  0x22   :  { %v197_v42 = vmul.f32 0.6931472, %v289_v40  ;;  %v291_v44 = vpop.eup %290  ;;  %v172_v45 = vadd.f32 %v171_v38, %v164_v35 }
  0x23   :  { %v184_v46 = vadd.f32 %v183_v41, %v176_v36  ;;  %v211_v48 = vmul.f32 0.6931472, %v291_v44 }
  0x24   :  { %v198_v47 = vadd.f32 %v197_v42, %v190_v39 }
  0x25   :  { %v185_v49 = vmul.f32 0.4, %v184_v46  ;;  %v212_v51 = vadd.f32 %v211_v48, %v204_v43 }
  0x26   :  { %v199_v50 = vmul.f32 0.3, %v198_v47 }
  0x27   :  { %v186_v52 = vadd.f32 %v185_v49, %v172_v45  ;;  %v213_v53 = vmul.f32 0.2, %v212_v51 }
  0x29   :  { %v200_v54 = vadd.f32 %v199_v50, %v186_v52 }
  0x2b   :  { %v214_v56 = vadd.f32 %v213_v53, %v200_v54 }
  0x2d   :  { %v216_v57 = vadd.f32 %v215_v55, %v214_v56 }
  0x2f   :  { %217 = vst [vmem:[#allocation2] sm:$0xf] %v216_v57 }
  0x36   :  { %v221_v58 = vld [vmem:[#allocation2] sm:$0xf] }
  0x37   :  { %v223_v59 = vsel %vm222_vm0, %v221_v58, 0.0 }
  0x38   :  { %224 = vadd.xlane.f32.xlu0 %v223_v59 }
  0xc5   :  { %v225_v60 = vpop.xlane.xlu0 %224 }
  0xc6   :  { %v226_v61 = vrot.slane %v225_v60, 4 }
  0xc8   :  { %v227_v62 = vadd.f32 %v226_v61, %v225_v60 }
  0xca   :  { %v228_v63 = vrot.slane %v227_v62, 2 }
  0xcc   :  { %v229_v0 = vadd.f32 %v228_v63, %v227_v62 }
  0xce   :  { %v230_v1 = vrot.slane %v229_v0, 1 }
  0xd0   :  { %v231_v2 = vadd.f32 %v230_v1, %v229_v0 }
  0xd2   :  { %273 = vpush %v231_v2 }
 0x103   :  { %s274_s2 = spop %273 }
 0x104   :  { %v236_v5 = vstv %s274_s2 }
 0x105   :  { %v237_v6 = vsel %vm235_vm1, %v236_v5, 0.0 }
 0x106   :  { %238 = vst [vmem:[%s346_s5] sm:$0x1] %v237_v6 }

</bundles_post_ra>
